<compile_context>
chip_gen: v7x
topology: tpu7x:2x2x1
jax: 0.10.0
libtpu: 0.0.40
codegen_flags: <defaults>
</compile_context>

<pallas_src>
import jax
import jax.numpy as jnp
from jax.experimental import pallas as pl
from jax.experimental.pallas import tpu as pltpu


# Largest lane tile (columns of the transposed activations) per grid step.
# fp32 footprint at S=8, TB=32768: x tile 1 MiB + out tile 256 KiB, ~2.5 MiB
# double-buffered — comfortably inside the scoped-VMEM budget on v5e (16 MiB
# default), v6e (32 MiB) and v7x (64 MiB physical), while amortizing the
# ~0.35 us per-grid-step overhead.
_TB_MAX = 32768


def _round_up(n: int, m: int) -> int:
    return ((n + m - 1) // m) * m


def _fused_kernel(xt_ref, p_ref, out_ref):
    """One lane-dense batch tile.

    xt_ref:  (S, TB)   f32, VMEM — transposed activations, batch on lanes.
    p_ref:   (S+1, 2)  f32, SMEM — rows [0:S] = W_eff, row S = b_eff.
    out_ref: (2, TB)   f32, VMEM — row 0 = mean, row 1 = std.
    """
    s_dim = xt_ref.shape[0]

    # VPU scalar-broadcast multiply-accumulate over the S features
    # (statically unrolled; scalars come from SMEM, vectors stay lane-dense).
    row0 = xt_ref[0:1, :]                                  # (1, TB)
    mean = p_ref[0, 0] * row0 + p_ref[s_dim, 0]
    stdp = p_ref[0, 1] * row0 + p_ref[s_dim, 1]
    for s in range(1, s_dim):
        row = xt_ref[s:s + 1, :]                           # (1, TB)
        mean = mean + p_ref[s, 0] * row
        stdp = stdp + p_ref[s, 1] * row

    # Branch-free, numerically stable softplus — std row only (mean is linear).
    std = jnp.maximum(stdp, 0.0) + jnp.log1p(jnp.exp(-jnp.abs(stdp)))

    out_ref[0:1, :] = mean
    out_ref[1:2, :] = std


@jax.jit
def neural_net_forward(x, params):
    """x: (B, state_dim) f32. params: dict of transposed weights / biases.

    Returns (mean, std), each (B, 1) float32 — same as the PyTorch module.
    """
    B, S = x.shape

    # ---- Fuse the purely-affine stack in f32 (tiny; one-off XLA work) ----
    w_heads = jnp.concatenate([params["wm"], params["ws"]], axis=1)            # (S, 2)
    b_heads = jnp.concatenate([params["bm"], params["bs"]], axis=1)            # (1, 2)
    w_eff = params["w1"] @ params["w2"] @ w_heads                              # (S, 2)
    b_eff = (params["b1"] @ params["w2"] + params["b2"]) @ w_heads + b_heads   # (1, 2)
    packed = jnp.concatenate([w_eff, b_eff], axis=0)                           # (S+1, 2)

    # ---- Lane-dense layout: features on sublanes, batch on the lane axis ----
    tb = min(_TB_MAX, _round_up(B, 128))     # lane tile, multiple of 128
    b_pad = _round_up(B, tb)                 # batch padded to a whole grid
    x_t = x.T                                                                  # (S, B)
    if b_pad != B:
        x_t = jnp.pad(x_t, ((0, 0), (0, b_pad - B)))

    out = pl.pallas_call(
        _fused_kernel,
        out_shape=jax.ShapeDtypeStruct((2, b_pad), jnp.float32),
        grid=(b_pad // tb,),
        in_specs=[
            # Lane-dense batch tile; automatically double-buffered per step.
            pl.BlockSpec((S, tb), lambda i: (0, i)),
            # 2*(S+1) scalars: whole array, SMEM-resident across all grid steps.
            pl.BlockSpec(memory_space=pltpu.MemorySpace.SMEM),
        ],
        out_specs=pl.BlockSpec((2, tb), lambda i: (0, i)),
        compiler_params=pltpu.CompilerParams(
            # Batch tiles are independent -> shard the grid across the two
            # TensorCores on v7x (harmless no-op on single-TC v5e/v6e).
            dimension_semantics=("parallel",),
            vmem_limit_bytes=32 * 1024 * 1024,
        ),
    )(x_t, packed)

    mean = out[0, :B].reshape(B, 1)
    std = out[1, :B].reshape(B, 1)
    return mean, std


def init_params(key, state_dim):
    """Deterministic init mimicking nn.Linear's U(-1/sqrt(fan_in), 1/sqrt(fan_in)).

    Weights are stored as (in_features, out_features); biases as (1, out_features).
    """
    def linear(k, fan_in, fan_out):
        kw, kb = jax.random.split(k)
        bound = 1.0 / jnp.sqrt(jnp.float32(fan_in))
        w = jax.random.uniform(kw, (fan_in, fan_out), jnp.float32, -bound, bound)
        b = jax.random.uniform(kb, (1, fan_out), jnp.float32, -bound, bound)
        return w, b

    k1, k2, k3, k4 = jax.random.split(key, 4)
    s = state_dim
    w1, b1 = linear(k1, s, 3 * s)
    w2, b2 = linear(k2, 3 * s, s)
    wm, bm = linear(k3, s, 1)
    ws, bs = linear(k4, s, 1)
    return {"w1": w1, "b1": b1, "w2": w2, "b2": b2,
            "wm": wm, "bm": bm, "ws": ws, "bs": bs}


def reference_forward(x, p):
    """Pure-JAX layer-by-layer reference matching the PyTorch module exactly."""
    h1 = x @ p["w1"] + p["b1"]
    h2 = h1 @ p["w2"] + p["b2"]
    mean = h2 @ p["wm"] + p["bm"]
    std_pre = h2 @ p["ws"] + p["bs"]
    # PyTorch softplus: beta=1, threshold=20.
    std = jnp.where(std_pre > 20.0, std_pre,
                    jnp.log1p(jnp.exp(jnp.minimum(std_pre, 20.0))))
    return mean, std


def _check(batch, state_dim, key):
    k_params, k_x = jax.random.split(key)
    params = init_params(k_params, state_dim)
    x = jax.random.normal(k_x, (batch, state_dim), dtype=jnp.float32)

    mean, std = neural_net_forward(x, params)
    jax.block_until_ready((mean, std))

    ref_mean, ref_std = reference_forward(x, params)
    assert mean.shape == (batch, 1) and std.shape == (batch, 1)
    assert jnp.allclose(mean, ref_mean, atol=1e-5, rtol=1e-5)
    assert jnp.allclose(std, ref_std, atol=1e-5, rtol=1e-5)
    assert bool(jnp.all(std > 0.0))   # softplus output is strictly positive


if __name__ == "__main__":
    key = jax.random.PRNGKey(0)
    k0, k1 = jax.random.split(key)

    # Small shapes consistent with the module (feed-forward policy net).
    _check(batch=2, state_dim=8, key=k0)
    # Also exercise the pad-to-lane-tile path with a non-multiple-of-128 batch.
    _check(batch=300, state_dim=8, key=k1)

    print("KERNEL_OK")
</pallas_src>

<mosaic_0001>
module attributes {stable_mosaic.version = 11 : i64} {
  func.func @_fused_kernel(%arg0: i32, %arg1: memref<8x128xf32, #tpu.memory_space<vmem>>, %arg2: memref<9x2xf32, #tpu.memory_space<smem>>, %arg3: memref<2x128xf32, #tpu.memory_space<vmem>>) attributes {dimension_semantics = [#tpu.dimension_semantics<parallel>], iteration_bounds = array<i64: 1>, scalar_prefetch = 0 : i64, scratch_operands = 0 : i64, tpu.core_type = #tpu.core_type<tc>, window_params = [{transform_indices = @transform_0, window_bounds = array<i64: 8, 128>}, {transform_indices = @transform_1, window_bounds = array<i64: 9, 2>}, {transform_indices = @transform_2, window_bounds = array<i64: 2, 128>}]} {
    %c0 = arith.constant 0 : index
    %c0_0 = arith.constant 0 : index
    %0 = vector.load %arg1[%c0, %c0_0] : memref<8x128xf32, #tpu.memory_space<vmem>>, vector<1x128xf32>
    %c0_1 = arith.constant 0 : index
    %c0_2 = arith.constant 0 : index
    %1 = memref.load %arg2[%c0_1, %c0_2] : memref<9x2xf32, #tpu.memory_space<smem>>
    %2 = vector.broadcast %1 : f32 to vector<1x128xf32>
    %3 = arith.mulf %2, %0 : vector<1x128xf32>
    %c8 = arith.constant 8 : index
    %c0_3 = arith.constant 0 : index
    %4 = memref.load %arg2[%c8, %c0_3] : memref<9x2xf32, #tpu.memory_space<smem>>
    %5 = vector.broadcast %4 : f32 to vector<1x128xf32>
    %6 = arith.addf %3, %5 : vector<1x128xf32>
    %c0_4 = arith.constant 0 : index
    %c1 = arith.constant 1 : index
    %7 = memref.load %arg2[%c0_4, %c1] : memref<9x2xf32, #tpu.memory_space<smem>>
    %8 = vector.broadcast %7 : f32 to vector<1x128xf32>
    %9 = arith.mulf %8, %0 : vector<1x128xf32>
    %c8_5 = arith.constant 8 : index
    %c1_6 = arith.constant 1 : index
    %10 = memref.load %arg2[%c8_5, %c1_6] : memref<9x2xf32, #tpu.memory_space<smem>>
    %11 = vector.broadcast %10 : f32 to vector<1x128xf32>
    %12 = arith.addf %9, %11 : vector<1x128xf32>
    %c1_7 = arith.constant 1 : index
    %c0_8 = arith.constant 0 : index
    %13 = vector.load %arg1[%c1_7, %c0_8] : memref<8x128xf32, #tpu.memory_space<vmem>>, vector<1x128xf32>
    %c1_9 = arith.constant 1 : index
    %c0_10 = arith.constant 0 : index
    %14 = memref.load %arg2[%c1_9, %c0_10] : memref<9x2xf32, #tpu.memory_space<smem>>
    %15 = vector.broadcast %14 : f32 to vector<1x128xf32>
    %16 = arith.mulf %15, %13 : vector<1x128xf32>
    %17 = arith.addf %6, %16 : vector<1x128xf32>
    %c1_11 = arith.constant 1 : index
    %c1_12 = arith.constant 1 : index
    %18 = memref.load %arg2[%c1_11, %c1_12] : memref<9x2xf32, #tpu.memory_space<smem>>
    %19 = vector.broadcast %18 : f32 to vector<1x128xf32>
    %20 = arith.mulf %19, %13 : vector<1x128xf32>
    %21 = arith.addf %12, %20 : vector<1x128xf32>
    %c2 = arith.constant 2 : index
    %c0_13 = arith.constant 0 : index
    %22 = vector.load %arg1[%c2, %c0_13] : memref<8x128xf32, #tpu.memory_space<vmem>>, vector<1x128xf32>
    %c2_14 = arith.constant 2 : index
    %c0_15 = arith.constant 0 : index
    %23 = memref.load %arg2[%c2_14, %c0_15] : memref<9x2xf32, #tpu.memory_space<smem>>
    %24 = vector.broadcast %23 : f32 to vector<1x128xf32>
    %25 = arith.mulf %24, %22 : vector<1x128xf32>
    %26 = arith.addf %17, %25 : vector<1x128xf32>
    %c2_16 = arith.constant 2 : index
    %c1_17 = arith.constant 1 : index
    %27 = memref.load %arg2[%c2_16, %c1_17] : memref<9x2xf32, #tpu.memory_space<smem>>
    %28 = vector.broadcast %27 : f32 to vector<1x128xf32>
    %29 = arith.mulf %28, %22 : vector<1x128xf32>
    %30 = arith.addf %21, %29 : vector<1x128xf32>
    %c3 = arith.constant 3 : index
    %c0_18 = arith.constant 0 : index
    %31 = vector.load %arg1[%c3, %c0_18] : memref<8x128xf32, #tpu.memory_space<vmem>>, vector<1x128xf32>
    %c3_19 = arith.constant 3 : index
    %c0_20 = arith.constant 0 : index
    %32 = memref.load %arg2[%c3_19, %c0_20] : memref<9x2xf32, #tpu.memory_space<smem>>
    %33 = vector.broadcast %32 : f32 to vector<1x128xf32>
    %34 = arith.mulf %33, %31 : vector<1x128xf32>
    %35 = arith.addf %26, %34 : vector<1x128xf32>
    %c3_21 = arith.constant 3 : index
    %c1_22 = arith.constant 1 : index
    %36 = memref.load %arg2[%c3_21, %c1_22] : memref<9x2xf32, #tpu.memory_space<smem>>
    %37 = vector.broadcast %36 : f32 to vector<1x128xf32>
    %38 = arith.mulf %37, %31 : vector<1x128xf32>
    %39 = arith.addf %30, %38 : vector<1x128xf32>
    %c4 = arith.constant 4 : index
    %c0_23 = arith.constant 0 : index
    %40 = vector.load %arg1[%c4, %c0_23] : memref<8x128xf32, #tpu.memory_space<vmem>>, vector<1x128xf32>
    %c4_24 = arith.constant 4 : index
    %c0_25 = arith.constant 0 : index
    %41 = memref.load %arg2[%c4_24, %c0_25] : memref<9x2xf32, #tpu.memory_space<smem>>
    %42 = vector.broadcast %41 : f32 to vector<1x128xf32>
    %43 = arith.mulf %42, %40 : vector<1x128xf32>
    %44 = arith.addf %35, %43 : vector<1x128xf32>
    %c4_26 = arith.constant 4 : index
    %c1_27 = arith.constant 1 : index
    %45 = memref.load %arg2[%c4_26, %c1_27] : memref<9x2xf32, #tpu.memory_space<smem>>
    %46 = vector.broadcast %45 : f32 to vector<1x128xf32>
    %47 = arith.mulf %46, %40 : vector<1x128xf32>
    %48 = arith.addf %39, %47 : vector<1x128xf32>
    %c5 = arith.constant 5 : index
    %c0_28 = arith.constant 0 : index
    %49 = vector.load %arg1[%c5, %c0_28] : memref<8x128xf32, #tpu.memory_space<vmem>>, vector<1x128xf32>
    %c5_29 = arith.constant 5 : index
    %c0_30 = arith.constant 0 : index
    %50 = memref.load %arg2[%c5_29, %c0_30] : memref<9x2xf32, #tpu.memory_space<smem>>
    %51 = vector.broadcast %50 : f32 to vector<1x128xf32>
    %52 = arith.mulf %51, %49 : vector<1x128xf32>
    %53 = arith.addf %44, %52 : vector<1x128xf32>
    %c5_31 = arith.constant 5 : index
    %c1_32 = arith.constant 1 : index
    %54 = memref.load %arg2[%c5_31, %c1_32] : memref<9x2xf32, #tpu.memory_space<smem>>
    %55 = vector.broadcast %54 : f32 to vector<1x128xf32>
    %56 = arith.mulf %55, %49 : vector<1x128xf32>
    %57 = arith.addf %48, %56 : vector<1x128xf32>
    %c6 = arith.constant 6 : index
    %c0_33 = arith.constant 0 : index
    %58 = vector.load %arg1[%c6, %c0_33] : memref<8x128xf32, #tpu.memory_space<vmem>>, vector<1x128xf32>
    %c6_34 = arith.constant 6 : index
    %c0_35 = arith.constant 0 : index
    %59 = memref.load %arg2[%c6_34, %c0_35] : memref<9x2xf32, #tpu.memory_space<smem>>
    %60 = vector.broadcast %59 : f32 to vector<1x128xf32>
    %61 = arith.mulf %60, %58 : vector<1x128xf32>
    %62 = arith.addf %53, %61 : vector<1x128xf32>
    %c6_36 = arith.constant 6 : index
    %c1_37 = arith.constant 1 : index
    %63 = memref.load %arg2[%c6_36, %c1_37] : memref<9x2xf32, #tpu.memory_space<smem>>
    %64 = vector.broadcast %63 : f32 to vector<1x128xf32>
    %65 = arith.mulf %64, %58 : vector<1x128xf32>
    %66 = arith.addf %57, %65 : vector<1x128xf32>
    %c7 = arith.constant 7 : index
    %c0_38 = arith.constant 0 : index
    %67 = vector.load %arg1[%c7, %c0_38] : memref<8x128xf32, #tpu.memory_space<vmem>>, vector<1x128xf32>
    %c7_39 = arith.constant 7 : index
    %c0_40 = arith.constant 0 : index
    %68 = memref.load %arg2[%c7_39, %c0_40] : memref<9x2xf32, #tpu.memory_space<smem>>
    %69 = vector.broadcast %68 : f32 to vector<1x128xf32>
    %70 = arith.mulf %69, %67 : vector<1x128xf32>
    %71 = arith.addf %62, %70 : vector<1x128xf32>
    %c7_41 = arith.constant 7 : index
    %c1_42 = arith.constant 1 : index
    %72 = memref.load %arg2[%c7_41, %c1_42] : memref<9x2xf32, #tpu.memory_space<smem>>
    %73 = vector.broadcast %72 : f32 to vector<1x128xf32>
    %74 = arith.mulf %73, %67 : vector<1x128xf32>
    %75 = arith.addf %66, %74 : vector<1x128xf32>
    %cst = arith.constant 0.000000e+00 : f32
    %76 = vector.broadcast %cst : f32 to vector<1x128xf32>
    %77 = arith.maximumf %75, %76 : vector<1x128xf32>
    %78 = math.absf %75 : vector<1x128xf32>
    %cst_43 = arith.constant 0.000000e+00 : f32
    %79 = vector.broadcast %cst_43 : f32 to vector<1x128xf32>
    %80 = arith.subf %79, %78 : vector<1x128xf32>
    %81 = math.exp %80 : vector<1x128xf32>
    %82 = math.log1p %81 : vector<1x128xf32>
    %83 = arith.addf %77, %82 : vector<1x128xf32>
    %c0_44 = arith.constant 0 : index
    %c0_45 = arith.constant 0 : index
    %84 = vector.load %arg3[%c0_44, %c0_45] : memref<2x128xf32, #tpu.memory_space<vmem>>, vector<1x128xf32>
    tpu.vector_store %arg3[%c0_44, %c0_45], %71 {strides = array<i32>} : memref<2x128xf32, #tpu.memory_space<vmem>>, vector<1x128xf32>,
    %c1_46 = arith.constant 1 : index
    %c0_47 = arith.constant 0 : index
    %85 = vector.load %arg3[%c1_46, %c0_47] : memref<2x128xf32, #tpu.memory_space<vmem>>, vector<1x128xf32>
    tpu.vector_store %arg3[%c1_46, %c0_47], %83 {strides = array<i32>} : memref<2x128xf32, #tpu.memory_space<vmem>>, vector<1x128xf32>,
    return
  }
  func.func @transform_0(%arg0: i32) -> (i32, i32) {
    %c0_i32 = arith.constant 0 : i32
    %c0_i32_0 = arith.constant 0 : i32
    return %c0_i32, %arg0 : i32, i32
  }
  func.func @transform_1(%arg0: i32) -> (i32, i32) {
    %c0_i32 = arith.constant 0 : i32
    %c0_i32_0 = arith.constant 0 : i32
    %c0_i32_1 = arith.constant 0 : i32
    return %c0_i32, %c0_i32_0 : i32, i32
  }
  func.func @transform_2(%arg0: i32) -> (i32, i32) {
    %c0_i32 = arith.constant 0 : i32
    %c0_i32_0 = arith.constant 0 : i32
    return %c0_i32, %arg0 : i32, i32
  }
}

</mosaic_0001>

<bundles_post_ra>
// kernel: neural_net_forward.1
= control target key start
LH: loop header
LB: loop body
LE: loop exit
PB: predicated region body
PF: predicated region fallthrough
CT: control target
= control target key end

     0   :  { %7 = vsyncpa [#allocation3], 0  ;;  %s246_s0 = inlined_call_operand.vmem [shape: f32[8,128], index: 0, kind: input, shape index: {}]   ;;  %s247_s1 = inlined_call_operand.vmem [shape: f32[9,2], index: 1, kind: input, shape index: {}]   ;;  %s248_s2 = inlined_call_operand.vmem [shape: f32[2,128], index: 2, kind: output, shape index: {}]  }
   0x1   :  { %s15_s11 = sshll.u32 %s247_s1, 4  ;;  %s16_s11 = int_to_ptr.vmem [resolvable:$true] %s15_s11 }
   0x2   :  { %s148_s12 = scalar_lea.vmem %s16_s11, 256  ;;  %p153_p1 = scmp.lt.s32.totalorder %s16_s11, %s16_s11 }
   0x3   :  { %p149_p0 = scmp.ne.s32.totalorder %s16_s11, %s148_s12  ;;  %p154_p2 = scmp.lt.s32.totalorder %s148_s12, %s148_s12 }
   0x5   :  { %p155_p3 = por %p154_p2, %p153_p1 }
   0x7   :  { %p156_p4 = pnand %p155_p3, %p149_p0 }
   0x9   :  { %159 = shalt.err (!%p156_p4)
}
   0xa   :  { %s162_s13 = smov [#allocation2]   ;;  %s163_s14 = smov 128  }
   0xb   :  { %s164_s15 = smov 8  }
   0xc   :  { %21 = dma.vmem_to_smem %s16_s11, 256, %s162_s13, [#allocation3], %s163_s14, %s163_s14, %s164_s15  }
   0xd   :  { %160 = dma.done.wait [#allocation3], 256  }
   0xe   :  { %161 = vsyncadd [#allocation3], 4294967040 }
   0xf   :  { %25 = sfence }
  0x10   :  { %s27_s16 = sld [smem:[#allocation2]]  ;;  %s183_s19 = sld [smem:[#allocation2 + $0x1]]  ;;  %v26_v0 = vld [vmem:[%s246_s0] sm:$0x1]  ;;  %v39_v4 = vld [vmem:[%s246_s0 + $0x1] sm:$0x1] }
  0x11   :  { %s124_s17 = sld [smem:[#allocation2 + $0x400]]  ;;  %s185_s21 = sld [smem:[#allocation2 + $0x81]]  ;;  %v48_v7 = vld [vmem:[%s246_s0 + $0x2] sm:$0x1]  ;;  %v57_v12 = vld [vmem:[%s246_s0 + $0x3] sm:$0x1] }
  0x12   :  { %s127_s18 = sld [smem:[#allocation2 + $0x80]]  ;;  %s194_s26 = sld [smem:[#allocation2 + $0x101]]  ;;  %v66_v18 = vld [vmem:[%s246_s0 + $0x4] sm:$0x1]  ;;  %v75_v24 = vld [vmem:[%s246_s0 + $0x5] sm:$0x1] }
  0x13   :  { %s129_s1 = sld [smem:[#allocation2 + $0x100]]  ;;  %s201_s30 = sld [smem:[#allocation2 + $0x181]]  ;;  %v84_v30 = vld [vmem:[%s246_s0 + $0x6] sm:$0x1]  ;;  %v93_v38 = vld [vmem:[%s246_s0 + $0x7] sm:$0x1] }
  0x14   :  { %s131_s20 = sld [smem:[#allocation2 + $0x180]]  ;;  %s208_s6 = sld [smem:[#allocation2 + $0x401]] }
  0x15   :  { %s187_s22 = sld [smem:[#allocation2 + $0x200]]  ;;  %s215_s9 = sld [smem:[#allocation2 + $0x201]] }
  0x16   :  { %s189_s23 = sld [smem:[#allocation2 + $0x280]]  ;;  %v28_v1 = vstv %s27_s16  ;;  %v34_v11 = vstv %s183_s19  ;;  %s222_s12 = sld [smem:[#allocation2 + $0x281]] }
  0x17   :  { %v31_v2 = vstv %s124_s17  ;;  %s196_s27 = sld [smem:[#allocation2 + $0x300]]  ;;  %v29_v3 = vmul.f32 %v28_v1, %v26_v0  ;;  %v45_v17 = vstv %s185_s21  ;;  %v35_v20 = vmul.f32 %v34_v11, %v26_v0  ;;  %s138_s15 = sld [smem:[#allocation2 + $0x301]] }
  0x18   :  { %v41_v5 = vstv %s127_s18  ;;  %s206_s5 = sld [smem:[#allocation2 + $0x380]]  ;;  %v54_v23 = vstv %s194_s26  ;;  %v46_v26 = vmul.f32 %v45_v17, %v39_v4  ;;  %s140_s18 = sld [smem:[#allocation2 + $0x381]] }
  0x19   :  { %v42_v6 = vmul.f32 %v41_v5, %v39_v4  ;;  %v50_v8 = vstv %s129_s1  ;;  %v32_v9 = vadd.f32 %v31_v2, %v29_v3  ;;  %v63_v29 = vstv %s201_s30 }
  0x1a   :  { %v51_v10 = vmul.f32 %v50_v8, %v48_v7  ;;  %v59_v13 = vstv %s131_s20  ;;  %v37_v32 = vstv %s208_s6  ;;  %v55_v33 = vmul.f32 %v54_v23, %v48_v7 }
  0x1b   :  { %v68_v14 = vstv %s187_s22  ;;  %v43_v15 = vadd.f32 %v42_v6, %v32_v9  ;;  %v60_v16 = vmul.f32 %v59_v13, %v57_v12  ;;  %v38_v36 = vadd.f32 %v37_v32, %v35_v20 }
  0x1c   :  { %v77_v19 = vstv %s189_s23  ;;  %v69_v22 = vmul.f32 %v68_v14, %v66_v18  ;;  %v72_v37 = vstv %s215_s9  ;;  %v64_v39 = vmul.f32 %v63_v29, %v57_v12 }
  0x1d   :  { %v52_v21 = vadd.f32 %v51_v10, %v43_v15  ;;  %v86_v25 = vstv %s196_s27  ;;  %v78_v28 = vmul.f32 %v77_v19, %v75_v24  ;;  %v47_v42 = vadd.f32 %v46_v26, %v38_v36 }
  0x1e   :  { %v95_v31 = vstv %s206_s5  ;;  %v87_v35 = vmul.f32 %v86_v25, %v84_v30  ;;  %v81_v43 = vstv %s222_s12  ;;  %v73_v44 = vmul.f32 %v72_v37, %v66_v18 }
  0x1f   :  { %v61_v27 = vadd.f32 %v60_v16, %v52_v21  ;;  %v96_v41 = vmul.f32 %v95_v31, %v93_v38  ;;  %v56_v46 = vadd.f32 %v55_v33, %v47_v42  ;;  %v90_v47 = vstv %s138_s15 }
  0x20   :  { %v82_v48 = vmul.f32 %v81_v43, %v75_v24  ;;  %v99_v51 = vstv %s140_s18  ;;  %v91_v52 = vmul.f32 %v90_v47, %v84_v30 }
  0x21   :  { %v70_v34 = vadd.f32 %v69_v22, %v61_v27  ;;  %v65_v50 = vadd.f32 %v64_v39, %v56_v46  ;;  %v100_v54 = vmul.f32 %v99_v51, %v93_v38 }
  0x23   :  { %v79_v40 = vadd.f32 %v78_v28, %v70_v34  ;;  %v74_v53 = vadd.f32 %v73_v44, %v65_v50 }
  0x25   :  { %v88_v45 = vadd.f32 %v87_v35, %v79_v40  ;;  %v83_v55 = vadd.f32 %v82_v48, %v74_v53 }
  0x27   :  { %v97_v49 = vadd.f32 %v96_v41, %v88_v45  ;;  %v92_v56 = vadd.f32 %v91_v52, %v83_v55 }
  0x29   :  { %117 = vst [vmem:[%s248_s2] sm:$0x1] %v97_v49  ;;  %v101_v57 = vadd.f32 %v100_v54, %v92_v56 }
  0x2b   :  { %v103_v58 = vand.u32 2147483647, %v101_v57  ;;  %v102_v4 = vmax.f32 %v101_v57, 0.0 }
  0x2d   :  { %v104_v59 = vsub.f32 0.0, %v103_v58 }
  0x2f   :  { %v105_v60 = vmul.f32 1.442695, %v104_v59 }
  0x31   :  { %144 = vpow2.f32 %v105_v60 }
  0x3b   :  { %v145_v61 = vpop.eup %144 }
  0x3c   :  { %v107_v62 = vadd.f32 1.0, %v145_v61  ;;  %v110_v63 = vmul.f32 -0.5, %v145_v61  ;;  %v113_v1 = vand.u32 2147483647, %v145_v61 }
  0x3e   :  { %146 = vlog2.f32 %v107_v62  ;;  %v111_v0 = vadd.f32 1.0, %v110_v63  ;;  %vm114_vm0 = vcmp.lt.f32.partialorder %v113_v1, 0.0004427343 }
  0x40   :  { %v112_v2 = vmul.f32 %v145_v61, %v111_v0 }
  0x48   :  { %v147_v3 = vpop.eup %146 }
  0x49   :  { %v109_v5 = vmul.f32 0.6931472, %v147_v3 }
  0x4b   :  { %v115_v6 = vsel %vm114_vm0, %v112_v2, %v109_v5 }
  0x4c   :  { %v116_v7 = vadd.f32 %v115_v6, %v102_v4 }
  0x4e   :  { %118 = vst [vmem:[%s248_s2 + $0x1] sm:$0x1] %v116_v7 }
  0x4f   :  { %123 = vsyncpa [#allocation3], 1 }

</bundles_post_ra>
